<compile_context>
chip_gen: v7x
topology: tpu7x:2x2x1
jax: 0.10.0
libtpu: 0.0.40
codegen_flags: <defaults>
</compile_context>

<pallas_src>
import numpy as np
import jax
import jax.numpy as jnp
from jax.experimental import pallas as pl
from jax.experimental.pallas import tpu as pltpu


def _watermark_kernel(x_ref, m_ref, o_ref):
    # Streaming elementwise multiply.  Mask block is (1, rows_tile, lane) int8
    # (values exactly 0/1); cast to x dtype on the VPU (idle in this DMA-bound
    # kernel) and broadcast over the bn batch rows of the x block.
    o_ref[...] = x_ref[...] * m_ref[...].astype(x_ref.dtype)


def _largest_divisor_leq(n, cap):
    cap = max(1, min(n, int(cap)))
    for d in range(cap, 0, -1):
        if n % d == 0:
            return d
    return 1


def _sublane(itemsize):
    # dtype-native sublane packing: 8 for 4-byte, 16 for 2-byte, 32 for 1-byte.
    return {1: 32, 2: 16, 4: 8}.get(int(itemsize), 8)


def _choose_lane(chw_pad, max_lane):
    """Largest lane (multiple of 128, divisor of chw_pad, <= max_lane) keeping rows >= 8."""
    q = chw_pad // 128
    dmax = q // 8 if q >= 8 else q
    dmax = max(1, min(dmax, max(1, max_lane // 128)))
    return 128 * _largest_divisor_leq(q, dmax)


def _pick_rows_tile(rows, cap, sub):
    """Largest divisor of `rows` <= cap that is a multiple of sub (then 8)."""
    cap = max(1, min(rows, int(cap)))
    for req in (sub, 8):
        if req > rows:
            continue
        start = cap - cap % req
        for d in range(start, req - 1, -req):
            if d > 0 and rows % d == 0:
                return d
    # No sublane-aligned divisor <= cap: take the smallest multiple-of-8
    # divisor overall (minimizes VMEM), else the full axis (legal: full dim).
    for d in range(8, rows, 8):
        if rows % d == 0:
            return d
    return rows


def _default_block_bytes():
    try:
        kind = jax.devices()[0].device_kind.lower()
    except Exception:
        kind = ""
    # v5e: small scoped-VMEM default and slow HBM -> 2 MiB is plenty.
    # v6e/v7x: larger blocks amortize the ~0.35 us per-grid-step overhead.
    return 2 * 1024 * 1024 if "v5" in kind else 4 * 1024 * 1024


_MASK_CACHE = {}


def _flat_mask_i8(locations, C, H, W):
    """Cached 0/1 int8 mask over the flattened C*H*W axis."""
    loc = np.asarray(locations)
    key = (loc.tobytes(), int(C), int(H), int(W))
    m = _MASK_CACHE.get(key)
    if m is None:
        # NOTE: negative / out-of-range locations are not given the per-dim
        # wrapping / error semantics of the PyTorch reference; valid inputs only.
        flat = (loc[:, 0].astype(np.int64) * (H * W)
                + loc[:, 1].astype(np.int64) * W
                + loc[:, 2].astype(np.int64))
        mnp = np.ones((C * H * W,), dtype=np.int8)
        mnp[flat] = 0
        m = jnp.asarray(mnp)
        _MASK_CACHE[key] = m
    return m


def watermark_forward(x, locations, *, block_bytes=None):
    """x: (..., C, H, W) array; locations: (Nloc, 3) int array of [cha, row, col]."""
    C, H, W = x.shape[-3:]
    lead = x.shape[:-3]
    n = int(np.prod(lead)) if lead else 1
    chw = C * H * W
    itemsize = jnp.dtype(x.dtype).itemsize
    sub = _sublane(itemsize)
    if block_bytes is None:
        block_bytes = _default_block_bytes()

    mask_flat = _flat_mask_i8(locations, C, H, W)     # int8, cached across calls

    # Pad the flattened C*H*W axis to a multiple of 128 -> lane-dense blocks,
    # unmasked vector stores.  Padding is sliced off at the end (mask pad = 1).
    chw_pad = -(-chw // 128) * 128
    pad = chw_pad - chw
    x2 = x.reshape(n, chw)
    m2 = mask_flat
    if pad:
        x2 = jnp.pad(x2, ((0, 0), (0, pad)))
        m2 = jnp.pad(m2, ((0, pad),), constant_values=1)

    max_lane = max(128, block_bytes // (8 * itemsize))
    lane = _choose_lane(chw_pad, max_lane)
    rows = chw_pad // lane
    x3 = x2.reshape(n, rows, lane)
    m3 = m2.reshape(1, rows, lane)

    # Tile selection from the per-chip byte budget.
    row_bytes = lane * itemsize
    batch_bytes = rows * row_bytes                     # x bytes per batch element
    if batch_bytes <= block_bytes:
        rows_tile = rows                               # whole C*H*W per block
        bn = _largest_divisor_leq(n, block_bytes // batch_bytes)
    else:
        bn = 1
        rows_tile = _pick_rows_tile(rows, block_bytes // row_bytes, sub)

    # v7x has two TensorCores: ensure >= 2 grid steps when the block is big
    # enough for the split to be worth the extra per-step overhead.
    x_block_bytes = bn * rows_tile * lane * itemsize
    if (rows // rows_tile) * (n // bn) < 2 and x_block_bytes >= (512 << 10):
        if rows_tile % (2 * sub) == 0:
            rows_tile //= 2
        elif bn % 2 == 0:
            bn //= 2
        elif rows_tile % 16 == 0:
            rows_tile //= 2
        x_block_bytes = bn * rows_tile * lane * itemsize

    # Batch is the INNER grid axis so the mask block index (0, j, 0) is
    # constant between consecutive steps -> Pallas does not re-DMA it.
    grid = (rows // rows_tile, n // bn)

    mask_block_bytes = rows_tile * lane                # int8
    vmem_limit = int(max(32 << 20,
                         4 * x_block_bytes + 2 * mask_block_bytes + (1 << 20)))

    out = pl.pallas_call(
        _watermark_kernel,
        out_shape=jax.ShapeDtypeStruct((n, rows, lane), x.dtype),
        grid=grid,
        in_specs=[pl.BlockSpec((bn, rows_tile, lane), lambda j, i: (i, j, 0)),
                  pl.BlockSpec((1, rows_tile, lane), lambda j, i: (0, j, 0))],
        out_specs=pl.BlockSpec((bn, rows_tile, lane), lambda j, i: (i, j, 0)),
        compiler_params=pltpu.CompilerParams(
            dimension_semantics=("parallel", "parallel"),
            vmem_limit_bytes=vmem_limit),
    )(x3, m3)

    # TODO(synk): sparse donated-input variant (input_output_aliases={0: 0} +
    # scalar-prefetched list of affected tile indices, rewriting only tiles
    # that contain watermark pixels) for very large images with few masked pixels.

    out = out.reshape(n, chw_pad)
    if pad:
        out = out[:, :chw]
    return out.reshape(x.shape)


if __name__ == "__main__":
    # Small shapes consistent with the module: batch=2, C=4, H=W=16
    N, C, H, W = 2, 4, 16, 16
    num_masked = 10

    key = jax.random.PRNGKey(0)
    x = jax.random.normal(key, (N, C, H, W), dtype=jnp.float32)

    # deterministic synthetic watermark locations (Watermark.random equivalent)
    rng = np.random.default_rng(0)
    flat = rng.choice(C * H * W, size=num_masked, replace=False)
    locations = np.stack([flat // (H * W), (flat // W) % H, flat % W], axis=-1)

    out = watermark_forward(x, locations)
    out = jax.block_until_ready(out)

    # pure-JAX reference for verification
    mask = jnp.ones((C, H, W), dtype=x.dtype)
    mask = mask.at[locations[:, 0], locations[:, 1], locations[:, 2]].set(0.0)
    ref = x * mask

    np.testing.assert_allclose(np.asarray(out), np.asarray(ref), rtol=0, atol=0)
    assert np.all(np.asarray(out)[:, locations[:, 0], locations[:, 1], locations[:, 2]] == 0.0)

    print("KERNEL_OK")
</pallas_src>

<mosaic_0001>
module attributes {stable_mosaic.version = 11 : i64} {
  func.func @_watermark_kernel(%arg0: i32, %arg1: i32, %arg2: memref<2x8x128xf32, #tpu.memory_space<vmem>>, %arg3: memref<1x8x128xi8, #tpu.memory_space<vmem>>, %arg4: memref<2x8x128xf32, #tpu.memory_space<vmem>>) attributes {dimension_semantics = [#tpu.dimension_semantics<parallel>, #tpu.dimension_semantics<parallel>], iteration_bounds = array<i64: 1, 1>, scalar_prefetch = 0 : i64, scratch_operands = 0 : i64, tpu.core_type = #tpu.core_type<tc>, window_params = [{transform_indices = @transform_0, window_bounds = array<i64: 2, 8, 128>}, {transform_indices = @transform_1, window_bounds = array<i64: 1, 8, 128>}, {transform_indices = @transform_2, window_bounds = array<i64: 2, 8, 128>}]} {
    %c0 = arith.constant 0 : index
    %c0_0 = arith.constant 0 : index
    %c0_1 = arith.constant 0 : index
    %0 = vector.load %arg2[%c0, %c0_0, %c0_1] : memref<2x8x128xf32, #tpu.memory_space<vmem>>, vector<2x8x128xf32>
    %c0_2 = arith.constant 0 : index
    %c0_3 = arith.constant 0 : index
    %c0_4 = arith.constant 0 : index
    %1 = vector.load %arg3[%c0_2, %c0_3, %c0_4] : memref<1x8x128xi8, #tpu.memory_space<vmem>>, vector<1x8x128xi8>
    %2 = arith.sitofp %1 : vector<1x8x128xi8> to vector<1x8x128xf32>
    %3 = vector.broadcast %2 : vector<1x8x128xf32> to vector<2x8x128xf32>
    %4 = arith.mulf %0, %3 : vector<2x8x128xf32>
    %c0_5 = arith.constant 0 : index
    %c0_6 = arith.constant 0 : index
    %c0_7 = arith.constant 0 : index
    %5 = vector.load %arg4[%c0_5, %c0_6, %c0_7] : memref<2x8x128xf32, #tpu.memory_space<vmem>>, vector<2x8x128xf32>
    tpu.vector_store %arg4[%c0_5, %c0_6, %c0_7], %4 {strides = array<i32>} : memref<2x8x128xf32, #tpu.memory_space<vmem>>, vector<2x8x128xf32>,
    return
  }
  func.func @transform_0(%arg0: i32, %arg1: i32) -> (i32, i32, i32) {
    %c0_i32 = arith.constant 0 : i32
    %c0_i32_0 = arith.constant 0 : i32
    return %arg1, %arg0, %c0_i32 : i32, i32, i32
  }
  func.func @transform_1(%arg0: i32, %arg1: i32) -> (i32, i32, i32) {
    %c0_i32 = arith.constant 0 : i32
    %c0_i32_0 = arith.constant 0 : i32
    %c0_i32_1 = arith.constant 0 : i32
    return %c0_i32, %arg0, %c0_i32_0 : i32, i32, i32
  }
  func.func @transform_2(%arg0: i32, %arg1: i32) -> (i32, i32, i32) {
    %c0_i32 = arith.constant 0 : i32
    %c0_i32_0 = arith.constant 0 : i32
    return %arg1, %arg0, %c0_i32 : i32, i32, i32
  }
}

</mosaic_0001>

<bundles_post_ra>
// kernel: tpu_custom_call.1
= control target key start
LH: loop header
LB: loop body
LE: loop exit
PB: predicated region body
PF: predicated region fallthrough
CT: control target
= control target key end

     0   :  { %7 = vsyncpa [#allocation3], 0  ;;  %s156_s0 = inlined_call_operand.hbm [shape: f32[2,8,128], index: 0, kind: input, shape index: {}]   ;;  %s157_s1 = inlined_call_operand.vmem [shape: s8[1,8,128], index: 1, kind: input, shape index: {}]   ;;  %s158_s2 = inlined_call_operand.hbm [shape: f32[2,8,128], index: 2, kind: output, shape index: {}]  }
   0x1   :  { %8 = vsyncpa [#allocation4], 0  ;;  %s104_s9 = smov [#allocation2]   ;;  %s56_s13 = scalar_lea.hbm %s156_s0, 256 }
   0x2   :  { %s14_s10 = sshll.u32 %s104_s9, 4  ;;  %p57_p0 = scmp.ne.s32.totalorder %s156_s0, %s56_s13  ;;  %s15_s10 = int_to_ptr.vmem [resolvable:$true] %s14_s10 }
   0x3   :  { %p60_p1 = scmp.lt.u32.totalorder %s56_s13, %s156_s0 }
   0x5   :  { %p62_p2 = pnand %p60_p1, %p57_p0 }
   0x7   :  { %65 = shalt.err (!%p62_p2)
}
   0x8   :  { %s66_s18 = scalar_lea.vmem %s15_s10, 256  ;;  %p71_p4 = scmp.lt.s32.totalorder %s15_s10, %s15_s10 }
   0x9   :  { %p67_p3 = scmp.ne.s32.totalorder %s15_s10, %s66_s18  ;;  %p72_p5 = scmp.lt.s32.totalorder %s66_s18, %s66_s18 }
   0xb   :  { %p73_p6 = por %p72_p5, %p71_p4 }
   0xd   :  { %p74_p7 = pnand %p73_p6, %p67_p3 }
   0xf   :  { %77 = shalt.err (!%p74_p7)
}
  0x10   :  { %s105_s19 = smov 128   ;;  %s106_s20 = smov 8  }
  0x11   :  { %20 = dma.hbm_to_vmem [thread:$0]  %s156_s0, 256, %s15_s10, [#allocation3], %s105_s19, %s105_s19, %s106_s20  }
  0x12   :  { %100 = dma.done.wait [#allocation3], 256  }
  0x13   :  { %101 = vsyncadd [#allocation3], 4294967040  ;;  %v28_v0 = vld [vmem:[%s157_s1] sm:$0x3]  ;;  %v27_v3 = vld [vmem:[#allocation2 + $0x8] sm:$0xff]  ;;  %s107_s25 = smov [#allocation5]  }
  0x14   :  { %v29_v1 = vunpack.c.0.s8 %v28_v0  ;;  %v26_v2 = vld [vmem:[#allocation2] sm:$0xff]  ;;  %s40_s26 = sshll.u32 %s107_s25, 4  ;;  %s41_s26 = int_to_ptr.vmem [resolvable:$true] %s40_s26 }
  0x15   :  { %s78_s27 = scalar_lea.vmem %s41_s26, 256  ;;  %p83_p9 = scmp.lt.s32.totalorder %s41_s26, %s41_s26 }
  0x16   :  { %v30_v4 = vcvt.s32.f32 %v29_v1  ;;  %p79_p8 = scmp.ne.s32.totalorder %s41_s26, %s78_s27  ;;  %p84_p10 = scmp.lt.s32.totalorder %s78_s27, %s78_s27 }
  0x18   :  { %v31_v5 = vmul.f32 %v30_v4, %v26_v2  ;;  %v32_v6 = vmul.f32 %v30_v4, %v27_v3  ;;  %p85_p11 = por %p84_p10, %p83_p9 }
  0x1a   :  { %33 = vst [vmem:[#allocation5] sm:$0xff] %v31_v5  ;;  %34 = vst [vmem:[#allocation5 + $0x8] sm:$0xff] %v32_v6  ;;  %p86_p12 = pnand %p85_p11, %p79_p8 }
  0x1c   :  { %89 = shalt.err (!%p86_p12)
}
  0x1d   :  { %s90_s28 = scalar_lea.hbm %s158_s2, 256 }
  0x1e   :  { %p91_p13 = scmp.ne.s32.totalorder %s158_s2, %s90_s28  ;;  %p94_p0 = scmp.lt.u32.totalorder %s90_s28, %s158_s2 }
  0x20   :  { %p96_p1 = pnand %p94_p0, %p91_p13 }
  0x22   :  { %99 = shalt.err (!%p96_p1)
}
  0x23   :  { %46 = dma.vmem_to_hbm [thread:$0]  %s41_s26, 256, %s158_s2, [#allocation4], %s105_s19, %s105_s19, %s106_s20  }
  0x24   :  { %102 = dma.done.wait [#allocation4], 256  }
  0x25   :  { %103 = vsyncadd [#allocation4], 4294967040 }
  0x26   :  { %50 = vsyncpa [#allocation3], 1 }
  0x27   :  { %51 = vsyncpa [#allocation4], 1 }

</bundles_post_ra>
